<compile_context>
chip_gen: v7x
topology: tpu7x:2x2x1
jax: 0.10.0
libtpu: 0.0.40
codegen_flags: <defaults>
</compile_context>

<pallas_src>
import jax
import jax.numpy as jnp
from jax.experimental import pallas as pl
from jax.experimental.pallas import tpu as pltpu

NUM_MCARD_ACTION = 309                 # in_features
ALL_MCARD_ACTION_EMBEDDING_DIM = 100   # out_features


def _round_up(n, m):
    return ((n + m - 1) // m) * m


def _linear_kernel(x_ref, w_ref, b_ref, o_ref):
    # x_ref: (TB, 309) compute_dtype, w_ref: (309, 100) compute_dtype,
    # b_ref: (1, 100) f32, o_ref: (TB, 100) f32
    acc = jnp.dot(x_ref[...], w_ref[...], preferred_element_type=jnp.float32)
    o_ref[...] = (acc + b_ref[...]).astype(o_ref.dtype)


def card_all_mcard_action_encode(x, weight, bias, *, tile_rows=2048,
                                 compute_dtype=jnp.bfloat16):
    """Pallas equivalent of CardAllMcardActionEncode: y = x @ W.T + b.

    Args:
      x:      (B, 309) float32
      weight: (100, 309) float32  (PyTorch nn.Linear layout)
      bias:   (100,)    float32
      tile_rows:     max batch-tile size (rows per grid step).
      compute_dtype: dtype x / weight are cast to for the MXU feed
                     (bf16 default; f32 accumulation is always kept).
    Returns:
      (B, 100) float32
    """
    B, in_dim = x.shape
    out_dim, in_dim_w = weight.shape
    assert in_dim == in_dim_w == NUM_MCARD_ACTION
    assert out_dim == ALL_MCARD_ACTION_EMBEDDING_DIM

    compute_dtype = jnp.dtype(compute_dtype)
    out_dtype = x.dtype
    bytes_in = compute_dtype.itemsize
    bytes_out = jnp.dtype(out_dtype).itemsize
    sublane = 32 // bytes_in          # 8 for f32, 16 for bf16 (packing)

    # Glue ops (tiny, once per call): transpose + dtype casts, 2-D bias.
    x_c = x.astype(compute_dtype)
    w_t = weight.T.astype(compute_dtype)          # (309, 100)
    b2d = bias.reshape(1, out_dim).astype(jnp.float32)

    # Batch tile: aim for >= 2 grid steps (so v7x megacore gets both TCs fed),
    # capped at tile_rows, rounded to the sublane multiple.  If that still
    # covers the whole batch, fall back to a single full-batch block
    # (block == full dim is always legal regardless of divisibility).
    half = pl.cdiv(B, 2)
    tb = min(tile_rows, _round_up(half, sublane))
    if tb >= B:
        tb = B
    assert tb == B or tb % sublane == 0, (
        f"tile rows {tb} must be a multiple of {sublane} (or equal B={B})")
    grid = (pl.cdiv(B, tb),)

    # Advisory cost for XLA's scheduler (memory-bound op).
    cost = pl.CostEstimate(
        flops=2 * B * in_dim * out_dim,
        bytes_accessed=(B * in_dim * bytes_in          # x read
                        + B * out_dim * bytes_out      # y write
                        + in_dim * out_dim * bytes_in  # weight read
                        + out_dim * 4),                # bias read
        transcendentals=0,
    )

    # Per-step VMEM: double-buffered x & out tiles + resident weight/bias.
    # Only override the scoped-VMEM limit if a large caller tile needs it
    # (v5e default scoped limit is 16 MiB).
    vmem_bytes = (2 * tb * in_dim * bytes_in
                  + 2 * tb * out_dim * bytes_out
                  + in_dim * out_dim * bytes_in
                  + out_dim * 4)
    cp_kwargs = dict(dimension_semantics=("parallel",))
    if vmem_bytes > 12 * 1024 * 1024:
        cp_kwargs["vmem_limit_bytes"] = int(vmem_bytes * 3 // 2)

    return pl.pallas_call(
        _linear_kernel,
        out_shape=jax.ShapeDtypeStruct((B, out_dim), out_dtype),
        grid=grid,
        in_specs=[
            pl.BlockSpec((tb, in_dim), lambda i: (i, 0)),       # x tile (walks batch)
            pl.BlockSpec((in_dim, out_dim), lambda i: (0, 0)),  # weight (VMEM-resident)
            pl.BlockSpec((1, out_dim), lambda i: (0, 0)),       # bias   (VMEM-resident)
        ],
        out_specs=pl.BlockSpec((tb, out_dim), lambda i: (i, 0)),
        compiler_params=pltpu.CompilerParams(**cp_kwargs),
        cost_estimate=cost,
    )(x_c, w_t, b2d)


if __name__ == "__main__":
    key = jax.random.PRNGKey(0)
    k_x, k_w, k_b, k_x2 = jax.random.split(key, 4)

    in_dim = NUM_MCARD_ACTION
    out_dim = ALL_MCARD_ACTION_EMBEDDING_DIM

    # Deterministic params (mimics PyTorch Linear's U(-1/sqrt(fan_in), ...)).
    bound = 1.0 / jnp.sqrt(jnp.float32(in_dim))
    weight = jax.random.uniform(k_w, (out_dim, in_dim), jnp.float32, -bound, bound)
    bias = jax.random.uniform(k_b, (out_dim,), jnp.float32, -bound, bound)

    # --- Check 1: f32 path, tiny batch (single-block path), exact-ish numerics.
    batch = 8
    x = jax.random.normal(k_x, (batch, in_dim), jnp.float32)
    out = jax.block_until_ready(
        card_all_mcard_action_encode(x, weight, bias, compute_dtype=jnp.float32))
    ref = x @ weight.T + bias
    assert out.shape == (batch, out_dim)
    assert jnp.allclose(out, ref, atol=1e-5, rtol=1e-5)

    # Reference for the bf16-input path: same quantization applied outside.
    def ref_bf16(xv):
        xb = xv.astype(jnp.bfloat16).astype(jnp.float32)
        wb = weight.astype(jnp.bfloat16).astype(jnp.float32)
        return xb @ wb.T + bias

    # --- Check 2: default bf16 path, batch big enough for 2 grid steps with a
    # ragged final block (264 rows -> tb=144, grid=(2,)).
    batch2 = 264
    x2 = jax.random.normal(k_x2, (batch2, in_dim), jnp.float32)
    out2 = jax.block_until_ready(card_all_mcard_action_encode(x2, weight, bias))
    assert out2.shape == (batch2, out_dim)
    assert jnp.allclose(out2, ref_bf16(x2), atol=1e-3, rtol=1e-3)

    # --- Check 3: bf16 path with a small caller tile (grid=(3,), pipelined).
    out3 = jax.block_until_ready(
        card_all_mcard_action_encode(x2, weight, bias, tile_rows=128))
    assert out3.shape == (batch2, out_dim)
    assert jnp.allclose(out3, ref_bf16(x2), atol=1e-3, rtol=1e-3)

    print("KERNEL_OK")
</pallas_src>

<mosaic_0001>
module attributes {stable_mosaic.version = 11 : i64} {
  func.func @_linear_kernel(%arg0: i32, %arg1: memref<8x309xf32, #tpu.memory_space<vmem>>, %arg2: memref<309x100xf32, #tpu.memory_space<vmem>>, %arg3: memref<1x100xf32, #tpu.memory_space<vmem>>, %arg4: memref<8x100xf32, #tpu.memory_space<vmem>>) attributes {dimension_semantics = [#tpu.dimension_semantics<parallel>], iteration_bounds = array<i64: 1>, scalar_prefetch = 0 : i64, scratch_operands = 0 : i64, tpu.core_type = #tpu.core_type<tc>, window_params = [{transform_indices = @transform_0, window_bounds = array<i64: 8, 309>}, {pipeline_mode = #tpu.pipeline_mode<synchronous>, transform_indices = @transform_1, window_bounds = array<i64: 309, 100>}, {pipeline_mode = #tpu.pipeline_mode<synchronous>, transform_indices = @transform_2, window_bounds = array<i64: 1, 100>}, {transform_indices = @transform_3, window_bounds = array<i64: 8, 100>}]} {
    %c0 = arith.constant 0 : index
    %c0_0 = arith.constant 0 : index
    %0 = vector.load %arg1[%c0, %c0_0] : memref<8x309xf32, #tpu.memory_space<vmem>>, vector<8x309xf32>
    %c0_1 = arith.constant 0 : index
    %c0_2 = arith.constant 0 : index
    %1 = vector.load %arg2[%c0_1, %c0_2] : memref<309x100xf32, #tpu.memory_space<vmem>>, vector<309x100xf32>
    %cst = arith.constant dense<0.000000e+00> : vector<8x100xf32>
    %2 = tpu.matmul %0, %1, %cst {dimension_numbers = #tpu.dot_dimension_numbers<[1], [0], [0], [1], [0, 0, 1, 1], [], []>} : vector<8x309xf32>, vector<309x100xf32>, vector<8x100xf32> -> vector<8x100xf32>
    %c0_3 = arith.constant 0 : index
    %c0_4 = arith.constant 0 : index
    %3 = vector.load %arg3[%c0_3, %c0_4] : memref<1x100xf32, #tpu.memory_space<vmem>>, vector<1x100xf32>
    %4 = vector.broadcast %3 : vector<1x100xf32> to vector<8x100xf32>
    %5 = arith.addf %2, %4 : vector<8x100xf32>
    %c0_5 = arith.constant 0 : index
    %c0_6 = arith.constant 0 : index
    %6 = vector.load %arg4[%c0_5, %c0_6] : memref<8x100xf32, #tpu.memory_space<vmem>>, vector<8x100xf32>
    tpu.vector_store %arg4[%c0_5, %c0_6], %5 {strides = array<i32>} : memref<8x100xf32, #tpu.memory_space<vmem>>, vector<8x100xf32>,
    return
  }
  func.func @transform_0(%arg0: i32) -> (i32, i32) {
    %c0_i32 = arith.constant 0 : i32
    %c0_i32_0 = arith.constant 0 : i32
    return %arg0, %c0_i32 : i32, i32
  }
  func.func @transform_1(%arg0: i32) -> (i32, i32) {
    %c0_i32 = arith.constant 0 : i32
    %c0_i32_0 = arith.constant 0 : i32
    %c0_i32_1 = arith.constant 0 : i32
    return %c0_i32, %c0_i32_0 : i32, i32
  }
  func.func @transform_2(%arg0: i32) -> (i32, i32) {
    %c0_i32 = arith.constant 0 : i32
    %c0_i32_0 = arith.constant 0 : i32
    %c0_i32_1 = arith.constant 0 : i32
    return %c0_i32, %c0_i32_0 : i32, i32
  }
  func.func @transform_3(%arg0: i32) -> (i32, i32) {
    %c0_i32 = arith.constant 0 : i32
    %c0_i32_0 = arith.constant 0 : i32
    return %arg0, %c0_i32 : i32, i32
  }
}

</mosaic_0001>

<bundles_post_ra>
// kernel: tpu_custom_call.1
= control target key start
LH: loop header
LB: loop body
LE: loop exit
PB: predicated region body
PF: predicated region fallthrough
CT: control target
= control target key end

     0   :  { %8 = vsyncpa [#allocation3], 0  ;;  %s516_s0 = inlined_call_operand.hbm [shape: f32[8,309], index: 0, kind: input, shape index: {}]   ;;  %s517_s1 = inlined_call_operand.hbm [shape: f32[309,100], index: 1, kind: input, shape index: {}]   ;;  %s518_s2 = inlined_call_operand.vmem [shape: f32[1,100], index: 2, kind: input, shape index: {}]   ;;  %s519_s3 = inlined_call_operand.hbm [shape: f32[8,100], index: 3, kind: output, shape index: {}]  }
   0x1   :  { %9 = vsyncpa [#allocation6], 0 }
   0x2   :  { %10 = vsyncpa [#allocation4], 0  ;;  %s440_s12 = smov [#allocation2]   ;;  %s441_s14 = smov [#allocation5]  }
   0x3   :  { %s17_s13 = sshll.u32 %s440_s12, 4  ;;  %s26_s15 = sshll.u32 %s441_s14, 4  ;;  %s18_s13 = int_to_ptr.vmem [resolvable:$true] %s17_s13  ;;  %s468_s15 = int_to_ptr.vmem [resolvable:$true] %s26_s15 }
   0x4   :  { %s368_s18 = scalar_lea.hbm %s516_s0, 384 }
   0x5   :  { %p369_p0 = scmp.ne.s32.totalorder %s516_s0, %s368_s18  ;;  %p372_p1 = scmp.lt.u32.totalorder %s368_s18, %s516_s0 }
   0x7   :  { %p374_p2 = pnand %p372_p1, %p369_p0 }
   0x9   :  { %377 = shalt.err (!%p374_p2)
}
   0xa   :  { %s378_s23 = scalar_lea.vmem %s18_s13, 384  ;;  %p383_p4 = scmp.lt.s32.totalorder %s18_s13, %s18_s13 }
   0xb   :  { %p379_p3 = scmp.ne.s32.totalorder %s18_s13, %s378_s23  ;;  %p384_p5 = scmp.lt.s32.totalorder %s378_s23, %s378_s23 }
   0xd   :  { %p385_p6 = por %p384_p5, %p383_p4 }
   0xf   :  { %p386_p7 = pnand %p385_p6, %p379_p3 }
  0x11   :  { %389 = shalt.err (!%p386_p7)
}
  0x12   :  { %20 = dma.hbm_to_vmem [thread:$0]  %s516_s0, 384, %s18_s13, [#allocation3]  }
  0x13   :  { %s390_s28 = scalar_lea.hbm %s517_s1, 4992 }
  0x14   :  { %p391_p8 = scmp.ne.s32.totalorder %s517_s1, %s390_s28  ;;  %p394_p9 = scmp.lt.u32.totalorder %s390_s28, %s517_s1 }
  0x16   :  { %p396_p10 = pnand %p394_p9, %p391_p8 }
  0x18   :  { %399 = shalt.err (!%p396_p10)
}
  0x19   :  { %s400_s6 = scalar_lea.vmem %s468_s15, 4992  ;;  %p405_p12 = scmp.lt.s32.totalorder %s468_s15, %s468_s15 }
  0x1a   :  { %p401_p11 = scmp.ne.s32.totalorder %s468_s15, %s400_s6  ;;  %p406_p13 = scmp.lt.s32.totalorder %s400_s6, %s400_s6 }
  0x1c   :  { %p407_p0 = por %p406_p13, %p405_p12 }
  0x1e   :  { %p408_p1 = pnand %p407_p0, %p401_p11 }
  0x20   :  { %411 = shalt.err (!%p408_p1)
}
  0x21   :  { %s442_s0 = smov 128   ;;  %s443_s7 = smov 8  }
  0x22   :  { %32 = dma.hbm_to_vmem [thread:$0]  %s517_s1, 4992, %s468_s15, [#allocation6], %s442_s0, %s442_s0, %s443_s7  }
  0x23   :  { %434 = dma.done.wait [#allocation3], 384  }
  0x24   :  { %435 = vsyncadd [#allocation3], 4294966912 }
  0x25   :  { %436 = dma.done.wait [#allocation6], 4992  }
  0x26   :  { %437 = vsyncadd [#allocation6], 4294962304  ;;  %v444_v0 = vmov 0.0|0.0   ;;  %vm445_vm0 = vmmov 0   ;;  %v446_v1 = vmov 0.0   ;;  %v60_v2 = vld [vmem:[#allocation5 + $0x80] sm:$0xff] }
  0x27   :  { %351 = vmatprep.subr.bf16.mxu1 %v444_v0  ;;  %316 = vmatprep.mubr.msk.f32.mxu1 %vm445_vm0, %v446_v1  ;;  %v61_v3 = vld [vmem:[#allocation5 + $0x88] sm:$0xff]  ;;  %v44_v4 = vld [vmem:[#allocation5] sm:$0xff]  ;;  %v62_v7 = vld [vmem:[#allocation5 + $0x90] sm:$0xff]  ;;  %vm94_vm1 = vcmask 1044480   ;;  %vm90_vm2 = vcmask 433152   ;;  %s447_s11 = smov [#allocation7]  }
  0x28   :  { %v319_v5 = vpack.c.bf16 %v61_v3, %v60_v2  ;;  %v45_v6 = vld [vmem:[#allocation5 + $0x8] sm:$0xff]  ;;  %v63_v8 = vld [vmem:[#allocation5 + $0x98] sm:$0xff]  ;;  %v46_v11 = vld [vmem:[#allocation5 + $0x10] sm:$0xff]  ;;  %s246_s12 = sshll.u32 %s447_s11, 4  ;;  %vm238_vm3 = vcmask 818176   ;;  %s247_s12 = int_to_ptr.vmem [resolvable:$true] %s246_s12 }
  0x29   :  { %v321_v9 = vpack.c.bf16 %v45_v6, %v44_v4  ;;  %v323_v10 = vpack.c.bf16 %v63_v8, %v62_v7  ;;  %v47_v12 = vld [vmem:[#allocation5 + $0x18] sm:$0xff]  ;;  %v64_v13 = vld [vmem:[#allocation5 + $0xa0] sm:$0xff]  ;;  %v65_v14 = vld [vmem:[#allocation5 + $0xa8] sm:$0xff]  ;;  %s412_s13 = scalar_lea.vmem %s247_s12, 128  ;;  %p417_p3 = scmp.lt.s32.totalorder %s247_s12, %s247_s12 }
  0x2a   :  { %320 = vmatprep.subr.bf16.mxu0 %v319_v5  ;;  %v325_v15 = vpack.c.bf16 %v47_v12, %v46_v11  ;;  %v327_v16 = vpack.c.bf16 %v65_v14, %v64_v13  ;;  %v48_v17 = vld [vmem:[#allocation5 + $0x20] sm:$0xff]  ;;  %v49_v18 = vld [vmem:[#allocation5 + $0x28] sm:$0xff]  ;;  %v66_v19 = vld [vmem:[#allocation5 + $0xb0] sm:$0xff]  ;;  %p413_p2 = scmp.ne.s32.totalorder %s247_s12, %s412_s13  ;;  %p418_p4 = scmp.lt.s32.totalorder %s412_s13, %s412_s13 }
  0x2b   :  { %322 = vmatpush3.bf16.msra.mxu0 %v321_v9  ;;  %v67_v20 = vld [vmem:[#allocation5 + $0xb8] sm:$0xff]  ;;  %v329_v21 = vpack.c.bf16 %v49_v18, %v48_v17  ;;  %v76_v22 = vld [vmem:[#allocation5 + $0x100] sm:$0xff]  ;;  %v77_v23 = vld [vmem:[#allocation5 + $0x108] sm:$0xff] }
  0x2c   :  { %324 = vmatprep.subr.bf16.mxu0 %v323_v10  ;;  %v331_v24 = vpack.c.bf16 %v67_v20, %v66_v19  ;;  %v50_v25 = vld [vmem:[#allocation5 + $0x30] sm:$0xff]  ;;  %v51_v26 = vld [vmem:[#allocation5 + $0x38] sm:$0xff]  ;;  %v68_v27 = vld [vmem:[#allocation5 + $0xc0] sm:$0xff]  ;;  %v352_v28 = vpack.c.bf16 %v77_v23, %v76_v22  ;;  %p419_p5 = por %p418_p4, %p417_p3 }
  0x2d   :  { %v69_v29 = vld [vmem:[#allocation5 + $0xc8] sm:$0xff]  ;;  %v78_v30 = vld [vmem:[#allocation5 + $0x110] sm:$0xff]  ;;  %v79_v31 = vld [vmem:[#allocation5 + $0x118] sm:$0xff]  ;;  %v333_v33 = vpack.c.bf16 %v51_v26, %v50_v25 }
  0x2e   :  { %353 = vmatpush3.bf16.msra.mxu1 %v352_v28  ;;  %v355_v32 = vpack.c.bf16 %v79_v31, %v78_v30  ;;  %v42_v34 = vld [vmem:[#allocation2 + $0x8] sm:$0xff]  ;;  %v80_v35 = vld [vmem:[#allocation5 + $0x120] sm:$0xff]  ;;  %v81_v36 = vld [vmem:[#allocation5 + $0x128] sm:$0xff]  ;;  %v335_v37 = vpack.c.bf16 %v69_v29, %v68_v27  ;;  %p420_p6 = pnand %p419_p5, %p413_p2 }
  0x2f   :  { %326 = vmatpush3.bf16.msra.mxu0 %v325_v15  ;;  %354 = vmatprep.subr.bf16.mxu1 %v444_v0  ;;  %v52_v38 = vld [vmem:[#allocation5 + $0x40] sm:$0xff]  ;;  %v53_v39 = vld [vmem:[#allocation5 + $0x48] sm:$0xff]  ;;  %v70_v40 = vld [vmem:[#allocation5 + $0xd0] sm:$0xff]  ;;  %v358_v42 = vpack.c.bf16 %v81_v36, %v80_v35 }
  0x30   :  { %328 = vmatprep.subr.bf16.mxu0 %v327_v16  ;;  %162 = vmatprep.mubr.f32.mxu0 %v42_v34  ;;  %v71_v41 = vld [vmem:[#allocation5 + $0xd8] sm:$0xff]  ;;  %v337_v43 = vpack.c.bf16 %v53_v39, %v52_v38  ;;  %v54_v45 = vld [vmem:[#allocation5 + $0x50] sm:$0xff]  ;;  %v72_v47 = vld [vmem:[#allocation5 + $0xe0] sm:$0xff] }
  0x31   :  { %v339_v44 = vpack.c.bf16 %v71_v41, %v70_v40  ;;  %v55_v46 = vld [vmem:[#allocation5 + $0x58] sm:$0xff]  ;;  %v73_v48 = vld [vmem:[#allocation5 + $0xe8] sm:$0xff]  ;;  %v82_v50 = vld [vmem:[#allocation5 + $0x130] sm:$0x1f] }
  0x32   :  { %356 = vmatpush3.bf16.msra.mxu1 %v355_v32  ;;  %v341_v49 = vpack.c.bf16 %v55_v46, %v54_v45  ;;  %v343_v51 = vpack.c.bf16 %v73_v48, %v72_v47  ;;  %v56_v52 = vld [vmem:[#allocation5 + $0x60] sm:$0xff]  ;;  %v57_v53 = vld [vmem:[#allocation5 + $0x68] sm:$0xff]  ;;  %v43_v54 = vld [vmem:[#allocation2 + $0x10] sm:$0xff] }
  0x33   :  { %330 = vmatpush3.bf16.msra.mxu0 %v329_v21  ;;  %357 = vmatprep.subr.bf16.mxu1 %v444_v0  ;;  %v74_v55 = vld [vmem:[#allocation5 + $0xf0] sm:$0xff]  ;;  %v75_v56 = vld [vmem:[#allocation5 + $0xf8] sm:$0xff]  ;;  %v345_v57 = vpack.c.bf16 %v57_v53, %v56_v52  ;;  %v41_v62 = vld [vmem:[#allocation2] sm:$0xff] }
  0x34   :  { %332 = vmatprep.subr.bf16.mxu0 %v331_v24  ;;  %v347_v58 = vpack.c.bf16 %v75_v56, %v74_v55  ;;  %v58_v59 = vld [vmem:[#allocation5 + $0x70] sm:$0xff]  ;;  %v59_v60 = vld [vmem:[#allocation5 + $0x78] sm:$0xff]  ;;  %v256_v3 = vld [vmem:[%s518_s2] ss:$0 sm:$0xff] }
  0x35   :  { %v349_v61 = vpack.c.bf16 %v59_v60, %v58_v59 }
  0x36   :  { %359 = vmatpush3.bf16.msra.mxu1 %v358_v42 }
  0x37   :  { %334 = vmatpush3.bf16.msra.mxu0 %v333_v33  ;;  %314 = vmatprep.subr.mxu1 %v446_v1 }
  0x38   :  { %336 = vmatprep.subr.bf16.mxu0 %v335_v37 }
  0x3a   :  { %315 = vmatpush3.msk.msra.mxu1 %vm94_vm1, %v82_v50 }
  0x3b   :  { %338 = vmatpush3.bf16.msra.mxu0 %v337_v43  ;;  %317 = vmatmul.mubr.msk.f32.vlgmr.msra.gmra.mrb[0].mxu1 %vm90_vm2, %v43_v54 }
  0x3c   :  { %340 = vmatprep.subr.bf16.mxu0 %v339_v44 }
  0x3f   :  { %342 = vmatpush3.bf16.msra.mxu0 %v341_v49 }
  0x40   :  { %344 = vmatprep.subr.bf16.mxu0 %v343_v51 }
  0x43   :  { %346 = vmatpush3.bf16.msra.mxu0 %v345_v57 }
  0x44   :  { %348 = vmatprep.subr.bf16.mxu0 %v347_v58 }
  0x47   :  { %350 = vmatpush3.bf16.msra.mxu0 %v349_v61 }
  0x4a   :  { %163 = vmatmul.mubr.f32.vlgmr.msra.gmra.mrb[0].mxu0 %v41_v62 }
 0x10e   :  { %v234_v63 = vpop.f32.mrb[0].mxu1 }
 0x10f   :  { %v318_v0 = vpop.f32.mrb[1].mxu1 }
 0x11d   :  { %v291_v1 = vpop.f32.mrb[0].mxu0 }
 0x11e   :  { %v292_v2 = vpop.f32.mrb[1].mxu0 }
 0x11f   :  { %v293_v4 = vadd.f32 %v292_v2, %v291_v1 }
 0x121   :  { %v165_v5 = vadd.f32 %v293_v4, %v256_v3 }
 0x123   :  { %v235_v6 = vadd.f32 %v234_v63, %v165_v5 }
 0x125   :  { %239 = vst.msk [vmem:[#allocation7] sm:$0xff] %vm238_vm3, %v235_v6 }
 0x126   :  { %423 = shalt.err (!%p420_p6)
}
 0x127   :  { %s424_s16 = scalar_lea.hbm %s519_s3, 128 }
 0x128   :  { %p425_p7 = scmp.ne.s32.totalorder %s519_s3, %s424_s16  ;;  %p428_p8 = scmp.lt.u32.totalorder %s424_s16, %s519_s3 }
 0x12a   :  { %p430_p9 = pnand %p428_p8, %p425_p7 }
 0x12c   :  { %433 = shalt.err (!%p430_p9)
}
 0x12d   :  { %249 = dma.vmem_to_hbm [thread:$0]  %s247_s12, 128, %s519_s3, [#allocation4]  }
 0x12e   :  { %438 = dma.done.wait [#allocation4], 128  }
 0x12f   :  { %439 = vsyncadd [#allocation4], 4294967168 }
 0x130   :  { %253 = vsyncpa [#allocation3], 1 }
 0x131   :  { %254 = vsyncpa [#allocation6], 1 }
 0x132   :  { %255 = vsyncpa [#allocation4], 1 }

</bundles_post_ra>
